<compile_context>
chip_gen: v7x
topology: tpu7x:2x2x1
jax: 0.10.0
libtpu: 0.0.40
codegen_flags: <defaults>
</compile_context>

<pallas_src>
import functools

import jax
import jax.numpy as jnp
from jax.experimental import pallas as pl
from jax.experimental.pallas import tpu as pltpu

N_BINARY = 10
N_CONTINUOUS = 10
EMBEDDING_DIM = 8
HIDDEN1 = 20
HIDDEN2 = 10
LN_EPS = 1e-5

_MAX_BATCH_TILE = 1024  # multiple of 8 and 128; ~160 KiB double-buffered VMEM


def _layernorm(h, gamma, beta, eps=LN_EPS):
    # LayerNorm over the last dim, biased variance (matches torch.nn.LayerNorm)
    mu = jnp.mean(h, axis=-1, keepdims=True)
    var = jnp.mean((h - mu) ** 2, axis=-1, keepdims=True)
    return (h - mu) * jax.lax.rsqrt(var + eps) * gamma + beta


def _mlp_kernel(x_ref,
                w1_ref, b1_ref, g1_ref, be1_ref,
                w2_ref, b2_ref, g2_ref, be2_ref,
                w3t_ref, b3_ref,
                out_ref):
    x = x_ref[...]                                              # [TB, 20]

    # layer1 (embedding already folded into w1/b1) + norm1 + relu1
    h = jnp.dot(x, w1_ref[...], preferred_element_type=jnp.float32)
    h = h + b1_ref[...]
    h = _layernorm(h, g1_ref[...], be1_ref[...])
    h = jnp.maximum(h, 0.0)

    # layer2 + norm2 + relu2
    h = jnp.dot(h, w2_ref[...], preferred_element_type=jnp.float32)
    h = h + b2_ref[...]
    h = _layernorm(h, g2_ref[...], be2_ref[...])
    h = jnp.maximum(h, 0.0)

    # layer3: single output unit -> VPU multiply + lane reduce (avoids a
    # degenerate N=1 MXU pass), stored lane-dense as a (1, TB) row.
    out_col = jnp.sum(h * w3t_ref[...], axis=-1, keepdims=True)  # [TB, 1]
    out_ref[...] = jnp.transpose(out_col) + b3_ref[...]          # [1, TB]


def init_params(key, n_binary=N_BINARY, n_continuous=N_CONTINUOUS,
                embedding_dim=EMBEDDING_DIM):
    total_in = n_binary * embedding_dim + n_continuous
    ks = jax.random.split(key, 4)

    def lin(k, fan_in, fan_out):
        kw, kb = jax.random.split(k)
        bound = 1.0 / jnp.sqrt(fan_in)
        w = jax.random.uniform(kw, (fan_in, fan_out), jnp.float32, -bound, bound)
        b = jax.random.uniform(kb, (1, fan_out), jnp.float32, -bound, bound)
        return w, b

    emb = jax.random.normal(ks[0], (2, embedding_dim), jnp.float32)
    w1, b1 = lin(ks[1], total_in, HIDDEN1)
    w2, b2 = lin(ks[2], HIDDEN1, HIDDEN2)
    w3, b3 = lin(ks[3], HIDDEN2, 1)
    return dict(
        emb=emb,
        w1=w1, b1=b1, g1=jnp.ones((1, HIDDEN1), jnp.float32),
        be1=jnp.zeros((1, HIDDEN1), jnp.float32),
        w2=w2, b2=b2, g2=jnp.ones((1, HIDDEN2), jnp.float32),
        be2=jnp.zeros((1, HIDDEN2), jnp.float32),
        w3=w3, b3=b3,
    )


def _fold_embedding(params, n_binary, embedding_dim):
    """Fold the 2-row embedding lookup into layer1's weights/bias.

    Exact for binary inputs in {0.0, 1.0} (the only domain the torch module
    supports): emb(b) = emb[0] + b * (emb[1] - emb[0]) is affine in b.
    """
    emb = params["emb"]                                   # [2, E]
    w1 = params["w1"]                                     # [nb*E + nc, H1]
    b1 = params["b1"]                                     # [1, H1]
    e0 = emb[0]
    delta = emb[1] - emb[0]                               # [E]
    nbe = n_binary * embedding_dim
    w1_bin = w1[:nbe].reshape(n_binary, embedding_dim, -1)        # [nb, E, H1]
    w1_bin_fold = jnp.einsum("e,jeh->jh", delta, w1_bin)          # [nb, H1]
    b1_fold = b1 + jnp.einsum("e,jeh->h", e0, w1_bin)[None, :]    # [1, H1]
    w1_fold = jnp.concatenate([w1_bin_fold, w1[nbe:]], axis=0)    # [nb+nc, H1]
    return w1_fold, b1_fold


@functools.partial(jax.jit, static_argnames=("n_binary", "embedding_dim"))
def simple_nn_forward(x, params, n_binary=N_BINARY, embedding_dim=EMBEDDING_DIM):
    # x: [B, n_binary + n_continuous] float32, binary columns in {0.0, 1.0}
    batch, d_in = x.shape

    # Fold (tiny, batch-independent; hoist & cache outside jit in a serving path).
    w1f, b1f = _fold_embedding(params, n_binary, embedding_dim)
    w3t = params["w3"].T                                  # [1, HIDDEN2]

    # Batch tile: whole batch when small (block == full array is always legal),
    # otherwise 1024 (multiple of 8 for the feature block and of 128 for the
    # lane-dense output block).
    tb = batch if batch <= _MAX_BATCH_TILE else _MAX_BATCH_TILE
    n_blocks = pl.cdiv(batch, tb)

    def const2d(a):
        return pl.BlockSpec(a.shape, lambda i: (0, 0))    # resident weights

    kernel_args = (
        x,
        w1f, b1f, params["g1"], params["be1"],
        params["w2"], params["b2"], params["g2"], params["be2"],
        w3t, params["b3"],
    )
    in_specs = [pl.BlockSpec((tb, d_in), lambda i: (i, 0))] + \
               [const2d(a) for a in kernel_args[1:]]

    out = pl.pallas_call(
        _mlp_kernel,
        grid=(n_blocks,),
        in_specs=in_specs,
        out_specs=pl.BlockSpec((1, tb), lambda i: (0, i)),
        out_shape=jax.ShapeDtypeStruct((1, batch), jnp.float32),
        compiler_params=pltpu.CompilerParams(
            dimension_semantics=("parallel",)),
    )(*kernel_args)

    return out[0]  # [B], matches torch's x.squeeze()


def _reference_forward(x, params, n_binary=N_BINARY):
    """Plain-JAX mirror of the PyTorch forward (for a correctness check)."""
    idx = x[:, :n_binary].astype(jnp.int32)
    cont = x[:, n_binary:]
    emb = jnp.take(params["emb"], idx, axis=0).reshape(x.shape[0], -1)
    feat = jnp.concatenate([emb, cont], axis=1)
    h = feat @ params["w1"] + params["b1"]
    h = jnp.maximum(_layernorm(h, params["g1"], params["be1"]), 0.0)
    h = h @ params["w2"] + params["b2"]
    h = jnp.maximum(_layernorm(h, params["g2"], params["be2"]), 0.0)
    out = h @ params["w3"] + params["b3"]
    return out[:, 0]


if __name__ == "__main__":
    key = jax.random.PRNGKey(0)
    k_params, k_bin, k_cont = jax.random.split(key, 3)

    params = init_params(k_params)

    batch = 8
    x_binary = jax.random.bernoulli(k_bin, 0.5, (batch, N_BINARY)).astype(jnp.float32)
    x_continuous = jax.random.normal(k_cont, (batch, N_CONTINUOUS), jnp.float32)
    x = jnp.concatenate([x_binary, x_continuous], axis=1)     # [8, 20]

    y = simple_nn_forward(x, params)
    jax.block_until_ready(y)

    y_ref = _reference_forward(x, params)
    assert y.shape == (batch,)
    assert jnp.allclose(y, y_ref, rtol=1e-3, atol=1e-3), "mismatch vs reference"
    print("KERNEL_OK")
</pallas_src>

<mosaic_0001>
module attributes {stable_mosaic.version = 11 : i64} {
  func.func @_mlp_kernel(%arg0: i32, %arg1: memref<8x20xf32, #tpu.memory_space<vmem>>, %arg2: memref<20x20xf32, #tpu.memory_space<vmem>>, %arg3: memref<1x20xf32, #tpu.memory_space<vmem>>, %arg4: memref<1x20xf32, #tpu.memory_space<vmem>>, %arg5: memref<1x20xf32, #tpu.memory_space<vmem>>, %arg6: memref<20x10xf32, #tpu.memory_space<vmem>>, %arg7: memref<1x10xf32, #tpu.memory_space<vmem>>, %arg8: memref<1x10xf32, #tpu.memory_space<vmem>>, %arg9: memref<1x10xf32, #tpu.memory_space<vmem>>, %arg10: memref<1x10xf32, #tpu.memory_space<vmem>>, %arg11: memref<1x1xf32, #tpu.memory_space<vmem>>, %arg12: memref<1x8xf32, #tpu.memory_space<vmem>>) attributes {dimension_semantics = [#tpu.dimension_semantics<parallel>], iteration_bounds = array<i64: 1>, scalar_prefetch = 0 : i64, scratch_operands = 0 : i64, tpu.core_type = #tpu.core_type<tc>, window_params = [{transform_indices = @transform_0, window_bounds = array<i64: 8, 20>}, {pipeline_mode = #tpu.pipeline_mode<synchronous>, transform_indices = @transform_1, window_bounds = array<i64: 20, 20>}, {pipeline_mode = #tpu.pipeline_mode<synchronous>, transform_indices = @transform_2, window_bounds = array<i64: 1, 20>}, {pipeline_mode = #tpu.pipeline_mode<synchronous>, transform_indices = @transform_3, window_bounds = array<i64: 1, 20>}, {pipeline_mode = #tpu.pipeline_mode<synchronous>, transform_indices = @transform_4, window_bounds = array<i64: 1, 20>}, {pipeline_mode = #tpu.pipeline_mode<synchronous>, transform_indices = @transform_5, window_bounds = array<i64: 20, 10>}, {pipeline_mode = #tpu.pipeline_mode<synchronous>, transform_indices = @transform_6, window_bounds = array<i64: 1, 10>}, {pipeline_mode = #tpu.pipeline_mode<synchronous>, transform_indices = @transform_7, window_bounds = array<i64: 1, 10>}, {pipeline_mode = #tpu.pipeline_mode<synchronous>, transform_indices = @transform_8, window_bounds = array<i64: 1, 10>}, {pipeline_mode = #tpu.pipeline_mode<synchronous>, transform_indices = @transform_9, window_bounds = array<i64: 1, 10>}, {pipeline_mode = #tpu.pipeline_mode<synchronous>, transform_indices = @transform_10, window_bounds = array<i64: 1, 1>}, {transform_indices = @transform_11, window_bounds = array<i64: 1, 8>}]} {
    %c0 = arith.constant 0 : index
    %c0_0 = arith.constant 0 : index
    %0 = vector.load %arg1[%c0, %c0_0] : memref<8x20xf32, #tpu.memory_space<vmem>>, vector<8x20xf32>
    %c0_1 = arith.constant 0 : index
    %c0_2 = arith.constant 0 : index
    %1 = vector.load %arg2[%c0_1, %c0_2] : memref<20x20xf32, #tpu.memory_space<vmem>>, vector<20x20xf32>
    %cst = arith.constant dense<0.000000e+00> : vector<8x20xf32>
    %2 = tpu.matmul %0, %1, %cst {dimension_numbers = #tpu.dot_dimension_numbers<[1], [0], [0], [1], [0, 0, 1, 1], [], []>} : vector<8x20xf32>, vector<20x20xf32>, vector<8x20xf32> -> vector<8x20xf32>
    %c0_3 = arith.constant 0 : index
    %c0_4 = arith.constant 0 : index
    %3 = vector.load %arg3[%c0_3, %c0_4] : memref<1x20xf32, #tpu.memory_space<vmem>>, vector<1x20xf32>
    %4 = vector.broadcast %3 : vector<1x20xf32> to vector<8x20xf32>
    %5 = arith.addf %2, %4 : vector<8x20xf32>
    %c0_5 = arith.constant 0 : index
    %c0_6 = arith.constant 0 : index
    %6 = vector.load %arg4[%c0_5, %c0_6] : memref<1x20xf32, #tpu.memory_space<vmem>>, vector<1x20xf32>
    %c0_7 = arith.constant 0 : index
    %c0_8 = arith.constant 0 : index
    %7 = vector.load %arg5[%c0_7, %c0_8] : memref<1x20xf32, #tpu.memory_space<vmem>>, vector<1x20xf32>
    %cst_9 = arith.constant dense<0.000000e+00> : vector<8xf32>
    %8 = vector.multi_reduction <add>, %5, %cst_9 [1] : vector<8x20xf32> to vector<8xf32>
    %9 = vector.shape_cast %8 : vector<8xf32> to vector<8x1xf32>
    %cst_10 = arith.constant 2.000000e+01 : f32
    %10 = vector.broadcast %cst_10 : f32 to vector<8x1xf32>
    %11 = arith.divf %9, %10 : vector<8x1xf32>
    %12 = vector.broadcast %11 : vector<8x1xf32> to vector<8x20xf32>
    %13 = arith.subf %5, %12 : vector<8x20xf32>
    %14 = arith.mulf %13, %13 : vector<8x20xf32>
    %cst_11 = arith.constant dense<0.000000e+00> : vector<8xf32>
    %15 = vector.multi_reduction <add>, %14, %cst_11 [1] : vector<8x20xf32> to vector<8xf32>
    %16 = vector.shape_cast %15 : vector<8xf32> to vector<8x1xf32>
    %cst_12 = arith.constant 2.000000e+01 : f32
    %17 = vector.broadcast %cst_12 : f32 to vector<8x1xf32>
    %18 = arith.divf %16, %17 : vector<8x1xf32>
    %19 = vector.broadcast %11 : vector<8x1xf32> to vector<8x20xf32>
    %20 = arith.subf %5, %19 : vector<8x20xf32>
    %cst_13 = arith.constant 9.99999974E-6 : f32
    %21 = vector.broadcast %cst_13 : f32 to vector<8x1xf32>
    %22 = arith.addf %18, %21 : vector<8x1xf32>
    %23 = math.rsqrt %22 : vector<8x1xf32>
    %24 = vector.broadcast %23 : vector<8x1xf32> to vector<8x20xf32>
    %25 = arith.mulf %20, %24 : vector<8x20xf32>
    %26 = vector.broadcast %6 : vector<1x20xf32> to vector<8x20xf32>
    %27 = arith.mulf %25, %26 : vector<8x20xf32>
    %28 = vector.broadcast %7 : vector<1x20xf32> to vector<8x20xf32>
    %29 = arith.addf %27, %28 : vector<8x20xf32>
    %cst_14 = arith.constant 0.000000e+00 : f32
    %30 = vector.broadcast %cst_14 : f32 to vector<8x20xf32>
    %31 = arith.maximumf %29, %30 : vector<8x20xf32>
    %c0_15 = arith.constant 0 : index
    %c0_16 = arith.constant 0 : index
    %32 = vector.load %arg6[%c0_15, %c0_16] : memref<20x10xf32, #tpu.memory_space<vmem>>, vector<20x10xf32>
    %cst_17 = arith.constant dense<0.000000e+00> : vector<8x10xf32>
    %33 = tpu.matmul %31, %32, %cst_17 {dimension_numbers = #tpu.dot_dimension_numbers<[1], [0], [0], [1], [0, 0, 1, 1], [], []>} : vector<8x20xf32>, vector<20x10xf32>, vector<8x10xf32> -> vector<8x10xf32>
    %c0_18 = arith.constant 0 : index
    %c0_19 = arith.constant 0 : index
    %34 = vector.load %arg7[%c0_18, %c0_19] : memref<1x10xf32, #tpu.memory_space<vmem>>, vector<1x10xf32>
    %35 = vector.broadcast %34 : vector<1x10xf32> to vector<8x10xf32>
    %36 = arith.addf %33, %35 : vector<8x10xf32>
    %c0_20 = arith.constant 0 : index
    %c0_21 = arith.constant 0 : index
    %37 = vector.load %arg8[%c0_20, %c0_21] : memref<1x10xf32, #tpu.memory_space<vmem>>, vector<1x10xf32>
    %c0_22 = arith.constant 0 : index
    %c0_23 = arith.constant 0 : index
    %38 = vector.load %arg9[%c0_22, %c0_23] : memref<1x10xf32, #tpu.memory_space<vmem>>, vector<1x10xf32>
    %cst_24 = arith.constant dense<0.000000e+00> : vector<8xf32>
    %39 = vector.multi_reduction <add>, %36, %cst_24 [1] : vector<8x10xf32> to vector<8xf32>
    %40 = vector.shape_cast %39 : vector<8xf32> to vector<8x1xf32>
    %cst_25 = arith.constant 1.000000e+01 : f32
    %41 = vector.broadcast %cst_25 : f32 to vector<8x1xf32>
    %42 = arith.divf %40, %41 : vector<8x1xf32>
    %43 = vector.broadcast %42 : vector<8x1xf32> to vector<8x10xf32>
    %44 = arith.subf %36, %43 : vector<8x10xf32>
    %45 = arith.mulf %44, %44 : vector<8x10xf32>
    %cst_26 = arith.constant dense<0.000000e+00> : vector<8xf32>
    %46 = vector.multi_reduction <add>, %45, %cst_26 [1] : vector<8x10xf32> to vector<8xf32>
    %47 = vector.shape_cast %46 : vector<8xf32> to vector<8x1xf32>
    %cst_27 = arith.constant 1.000000e+01 : f32
    %48 = vector.broadcast %cst_27 : f32 to vector<8x1xf32>
    %49 = arith.divf %47, %48 : vector<8x1xf32>
    %50 = vector.broadcast %42 : vector<8x1xf32> to vector<8x10xf32>
    %51 = arith.subf %36, %50 : vector<8x10xf32>
    %cst_28 = arith.constant 9.99999974E-6 : f32
    %52 = vector.broadcast %cst_28 : f32 to vector<8x1xf32>
    %53 = arith.addf %49, %52 : vector<8x1xf32>
    %54 = math.rsqrt %53 : vector<8x1xf32>
    %55 = vector.broadcast %54 : vector<8x1xf32> to vector<8x10xf32>
    %56 = arith.mulf %51, %55 : vector<8x10xf32>
    %57 = vector.broadcast %37 : vector<1x10xf32> to vector<8x10xf32>
    %58 = arith.mulf %56, %57 : vector<8x10xf32>
    %59 = vector.broadcast %38 : vector<1x10xf32> to vector<8x10xf32>
    %60 = arith.addf %58, %59 : vector<8x10xf32>
    %cst_29 = arith.constant 0.000000e+00 : f32
    %61 = vector.broadcast %cst_29 : f32 to vector<8x10xf32>
    %62 = arith.maximumf %60, %61 : vector<8x10xf32>
    %c0_30 = arith.constant 0 : index
    %c0_31 = arith.constant 0 : index
    %63 = vector.load %arg10[%c0_30, %c0_31] : memref<1x10xf32, #tpu.memory_space<vmem>>, vector<1x10xf32>
    %64 = vector.broadcast %63 : vector<1x10xf32> to vector<8x10xf32>
    %65 = arith.mulf %62, %64 : vector<8x10xf32>
    %cst_32 = arith.constant dense<0.000000e+00> : vector<8xf32>
    %66 = vector.multi_reduction <add>, %65, %cst_32 [1] : vector<8x10xf32> to vector<8xf32>
    %67 = vector.shape_cast %66 : vector<8xf32> to vector<8x1xf32>
    %68 = tpu.transpose %67, [1, 0] : vector<8x1xf32> -> vector<1x8xf32>
    %c0_33 = arith.constant 0 : index
    %c0_34 = arith.constant 0 : index
    %69 = vector.load %arg11[%c0_33, %c0_34] : memref<1x1xf32, #tpu.memory_space<vmem>>, vector<1x1xf32>
    %70 = vector.broadcast %69 : vector<1x1xf32> to vector<1x8xf32>
    %71 = arith.addf %68, %70 : vector<1x8xf32>
    %c0_35 = arith.constant 0 : index
    %c0_36 = arith.constant 0 : index
    %72 = vector.load %arg12[%c0_35, %c0_36] : memref<1x8xf32, #tpu.memory_space<vmem>>, vector<1x8xf32>
    tpu.vector_store %arg12[%c0_35, %c0_36], %71 {strides = array<i32>} : memref<1x8xf32, #tpu.memory_space<vmem>>, vector<1x8xf32>,
    return
  }
  func.func @transform_0(%arg0: i32) -> (i32, i32) {
    %c0_i32 = arith.constant 0 : i32
    %c0_i32_0 = arith.constant 0 : i32
    return %arg0, %c0_i32 : i32, i32
  }
  func.func @transform_1(%arg0: i32) -> (i32, i32) {
    %c0_i32 = arith.constant 0 : i32
    %c0_i32_0 = arith.constant 0 : i32
    %c0_i32_1 = arith.constant 0 : i32
    return %c0_i32, %c0_i32_0 : i32, i32
  }
  func.func @transform_2(%arg0: i32) -> (i32, i32) {
    %c0_i32 = arith.constant 0 : i32
    %c0_i32_0 = arith.constant 0 : i32
    %c0_i32_1 = arith.constant 0 : i32
    return %c0_i32, %c0_i32_0 : i32, i32
  }
  func.func @transform_3(%arg0: i32) -> (i32, i32) {
    %c0_i32 = arith.constant 0 : i32
    %c0_i32_0 = arith.constant 0 : i32
    %c0_i32_1 = arith.constant 0 : i32
    return %c0_i32, %c0_i32_0 : i32, i32
  }
  func.func @transform_4(%arg0: i32) -> (i32, i32) {
    %c0_i32 = arith.constant 0 : i32
    %c0_i32_0 = arith.constant 0 : i32
    %c0_i32_1 = arith.constant 0 : i32
    return %c0_i32, %c0_i32_0 : i32, i32
  }
  func.func @transform_5(%arg0: i32) -> (i32, i32) {
    %c0_i32 = arith.constant 0 : i32
    %c0_i32_0 = arith.constant 0 : i32
    %c0_i32_1 = arith.constant 0 : i32
    return %c0_i32, %c0_i32_0 : i32, i32
  }
  func.func @transform_6(%arg0: i32) -> (i32, i32) {
    %c0_i32 = arith.constant 0 : i32
    %c0_i32_0 = arith.constant 0 : i32
    %c0_i32_1 = arith.constant 0 : i32
    return %c0_i32, %c0_i32_0 : i32, i32
  }
  func.func @transform_7(%arg0: i32) -> (i32, i32) {
    %c0_i32 = arith.constant 0 : i32
    %c0_i32_0 = arith.constant 0 : i32
    %c0_i32_1 = arith.constant 0 : i32
    return %c0_i32, %c0_i32_0 : i32, i32
  }
  func.func @transform_8(%arg0: i32) -> (i32, i32) {
    %c0_i32 = arith.constant 0 : i32
    %c0_i32_0 = arith.constant 0 : i32
    %c0_i32_1 = arith.constant 0 : i32
    return %c0_i32, %c0_i32_0 : i32, i32
  }
  func.func @transform_9(%arg0: i32) -> (i32, i32) {
    %c0_i32 = arith.constant 0 : i32
    %c0_i32_0 = arith.constant 0 : i32
    %c0_i32_1 = arith.constant 0 : i32
    return %c0_i32, %c0_i32_0 : i32, i32
  }
  func.func @transform_10(%arg0: i32) -> (i32, i32) {
    %c0_i32 = arith.constant 0 : i32
    %c0_i32_0 = arith.constant 0 : i32
    %c0_i32_1 = arith.constant 0 : i32
    return %c0_i32, %c0_i32_0 : i32, i32
  }
  func.func @transform_11(%arg0: i32) -> (i32, i32) {
    %c0_i32 = arith.constant 0 : i32
    %c0_i32_0 = arith.constant 0 : i32
    return %c0_i32, %arg0 : i32, i32
  }
}

</mosaic_0001>

<bundles_post_ra>
// kernel: simple_nn_forward.1
= control target key start
LH: loop header
LB: loop body
LE: loop exit
PB: predicated region body
PF: predicated region fallthrough
CT: control target
= control target key end

     0   :  { %s558_s0 = inlined_call_operand.vmem [shape: f32[8,20], index: 0, kind: input, shape index: {}]   ;;  %s559_s1 = inlined_call_operand.vmem [shape: f32[20,20], index: 1, kind: input, shape index: {}]   ;;  %s560_s2 = inlined_call_operand.vmem [shape: f32[1,20], index: 2, kind: input, shape index: {}]   ;;  %s561_s3 = inlined_call_operand.vmem [shape: f32[1,20], index: 3, kind: input, shape index: {}]   ;;  %s562_s4 = inlined_call_operand.vmem [shape: f32[1,20], index: 4, kind: input, shape index: {}]   ;;  %s563_s5 = inlined_call_operand.vmem [shape: f32[20,10], index: 5, kind: input, shape index: {}]   ;;  %s564_s6 = inlined_call_operand.vmem [shape: f32[1,10], index: 6, kind: input, shape index: {}]   ;;  %s565_s7 = inlined_call_operand.vmem [shape: f32[1,10], index: 7, kind: input, shape index: {}]   ;;  %s566_s8 = inlined_call_operand.vmem [shape: f32[1,10], index: 8, kind: input, shape index: {}]   ;;  %s567_s9 = inlined_call_operand.vmem [shape: f32[1,10], index: 9, kind: input, shape index: {}]   ;;  %s568_s10 = inlined_call_operand.<no memory space> [shape: f32[1,1], index: 10, kind: input, shape index: {}]   ;;  %s569_s11 = inlined_call_operand.hbm [shape: f32[1,8], index: 11, kind: output, shape index: {}]  }
   0x1   :  { %v16_v0 = vstv %s568_s10 }
   0x2   :  { %17 = vst [vmem:[#allocation2] sm:$0x1] %v16_v0 }
   0x3   :  { %v42_v1 = vld [vmem:[%s559_s1] sm:$0xff]  ;;  %v43_v2 = vld [vmem:[%s559_s1 + $0x8] sm:$0xff]  ;;  %v427_v3 = vmov 0.0|0.0   ;;  %vm428_vm0 = vmmov 0   ;;  %v429_v5 = vmov 0.0  }
   0x4   :  { %386 = vmatprep.subr.bf16.mxu0 %v427_v3  ;;  %v387_v4 = vpack.c.bf16 %v43_v2, %v42_v1  ;;  %389 = vmatprep.subr.bf16.mxu1 %v427_v3 }
   0x5   :  { %374 = vmatprep.mubr.msk.f32.mxu0 %vm428_vm0, %v429_v5  ;;  %383 = vmatprep.mubr.msk.f32.mxu1 %vm428_vm0, %v429_v5 }
   0x6   :  { %18 = vsyncpa [#allocation4], 0  ;;  %388 = vmatpush3.bf16.msra.mxu0 %v387_v4  ;;  %v44_v6 = vld [vmem:[%s559_s1 + $0x10] sm:$0xf]  ;;  %vm56_vm1 = vcmask 1043456   ;;  %v41_v7 = vld [vmem:[%s558_s0] sm:$0xff]  ;;  %v328_v58 = vlaneseq }
   0x7   :  { %372 = vmatprep.subr.mxu0 %v429_v5  ;;  %vm52_vm2 = vcmask 162816   ;;  %v349_v8 = vld [vmem:[%s560_s2] ss:$0 sm:$0xff]  ;;  %v162_v19 = vld [vmem:[%s563_s5 + $0x8] sm:$0xff]  ;;  %v163_v21 = vld [vmem:[%s563_s5 + $0x10] sm:$0xf] }
   0x8   :  { %v161_v18 = vld [vmem:[%s563_s5] sm:$0xff]  ;;  %vm249_vm3 = vcmask 80896   ;;  %v430_v43 = vmov 0   ;;  %v329_v59 = vshrl.u32 %v328_v58, 7  ;;  %vm333_vm4 = vcmask 57344  }
   0x9   :  { %v390_v20 = vpack.c.bf16 %v162_v19, %v161_v18  ;;  %v352_v26 = vld [vmem:[%s561_s3] ss:$0 sm:$0xff]  ;;  %397 = vset.pattern.permute.xlu1 %v430_v43 }
   0xa   :  { %373 = vmatpush3.msk.msra.mxu0 %vm56_vm1, %v44_v6  ;;  %v353_v28 = vld [vmem:[%s562_s4] ss:$0 sm:$0xff]  ;;  %v330_v60 = vsub.s32 0, %v329_v59 }
   0xb   :  { %375 = vmatmul.mubr.msk.f32.vlgmr.msra.gmra.mrb[0].mxu0 %vm52_vm2, %v41_v7  ;;  %391 = vmatpush3.bf16.msra.mxu1 %v390_v20  ;;  %v354_v32 = vld [vmem:[%s564_s6] ss:$0 sm:$0xff] }
   0xc   :  { %381 = vmatprep.subr.mxu1 %v429_v5  ;;  %v322_v42 = vld [vmem:[#allocation2] sm:$0x1] }
   0xd   :  { %v357_v48 = vld [vmem:[%s565_s7] ss:$0 sm:$0xff]  ;;  %s431_s7 = smov [#allocation3]  }
   0xe   :  { %v358_v50 = vld [vmem:[%s566_s8] ss:$0 sm:$0xff]  ;;  %s341_s8 = sshll.u32 %s431_s7, 4  ;;  %s342_s8 = int_to_ptr.vmem [resolvable:$true] %s341_s8 }
   0xf   :  { %382 = vmatpush3.msk.msra.mxu1 %vm56_vm1, %v163_v21  ;;  %v359_v53 = vld [vmem:[%s567_s9] ss:$0 sm:$0xff]  ;;  %s403_s9 = scalar_lea.vmem %s342_s8, 16  ;;  %s407_s20 = scalar_lea.vmem %s342_s8, 32 }
  0x10   :  { %p404_p0 = scmp.ne.s32.totalorder %s342_s8, %s403_s9  ;;  %p408_p1 = scmp.lt.s32.totalorder %s342_s8, %s342_s8 }
  0x11   :  { %p409_p2 = scmp.lt.s32.totalorder %s407_s20, %s403_s9 }
  0x13   :  { %p410_p3 = por %p409_p2, %p408_p1 }
  0x15   :  { %p411_p4 = pnand %p410_p3, %p404_p0 }
  0xde   :  { %v126_v9 = vpop.f32.mrb[0].mxu0 }
  0xdf   :  { %v127_v10 = vadd.f32 %v349_v8, %v126_v9  ;;  %v376_v11 = vpop.f32.mrb[1].mxu0 }
  0xe1   :  { %v132_v12 = vsel %vm52_vm2, %v127_v10, 0.0 }
  0xe2   :  { %133 = vadd.xlane.f32.xlu0 %v132_v12 }
 0x16f   :  { %v134_v13 = vpop.xlane.xlu0 %133 }
 0x170   :  { %v136_v14 = vmul.f32 0.05, %v134_v13 }
 0x172   :  { %v137_v15 = vsub.f32 %v127_v10, %v136_v14 }
 0x174   :  { %v138_v16 = vmul.f32 %v137_v15, %v137_v15 }
 0x176   :  { %v139_v17 = vsel %vm52_vm2, %v138_v16, 0.0 }
 0x177   :  { %140 = vadd.xlane.f32.xlu0 %v139_v17 }
 0x204   :  { %v141_v22 = vpop.xlane.xlu0 %140 }
 0x205   :  { %v142_v23 = vmul.f32 0.05, %v141_v22 }
 0x207   :  { %v143_v24 = vadd.f32 1e-05, %v142_v23 }
 0x209   :  { %399 = vrsqrt.f32 %v143_v24 }
 0x213   :  { %v400_v25 = vpop.eup %399 }
 0x214   :  { %v145_v27 = vmul.f32 %v400_v25, %v137_v15 }
 0x216   :  { %v152_v29 = vmul.f32 %v352_v26, %v145_v27 }
 0x218   :  { %v159_v30 = vadd.f32 %v353_v28, %v152_v29 }
 0x21a   :  { %v160_v31 = vmax.f32 %v159_v30, 0.0 }
 0x21c   :  { %384 = vmatmul.mubr.msk.f32.vlgmr.msra.gmra.mrb[0].mxu1 %vm52_vm2, %v160_v31 }
 0x2ef   :  { %v243_v33 = vpop.f32.mrb[0].mxu1 }
 0x2f0   :  { %v244_v34 = vadd.f32 %v354_v32, %v243_v33  ;;  %v385_v35 = vpop.f32.mrb[1].mxu1 }
 0x2f2   :  { %v250_v36 = vsel %vm249_vm3, %v244_v34, 0.0 }
 0x2f3   :  { %251 = vadd.xlane.f32.xlu1 %v250_v36 }
 0x380   :  { %v252_v37 = vpop.xlane.xlu1 %251 }
 0x381   :  { %v254_v38 = vmul.f32 0.1, %v252_v37 }
 0x383   :  { %v255_v39 = vsub.f32 %v244_v34, %v254_v38 }
 0x385   :  { %v256_v40 = vmul.f32 %v255_v39, %v255_v39 }
 0x387   :  { %v257_v41 = vsel %vm249_vm3, %v256_v40, 0.0 }
 0x388   :  { %258 = vadd.xlane.f32.xlu1 %v257_v41 }
 0x399   :  { %325 = vperm.xlu1 %397, %v322_v42  }
 0x415   :  { %v259_v44 = vpop.xlane.xlu1 %258 }
 0x416   :  { %v260_v45 = vmul.f32 0.1, %v259_v44 }
 0x418   :  { %v261_v46 = vadd.f32 1e-05, %v260_v45 }
 0x419   :  { %v326_v61 = vpop.permute.xlu1 %325 }
 0x41a   :  { %401 = vrsqrt.f32 %v261_v46  ;;  %v331_v62 = vrot.slane %v326_v61, %v330_v60 }
 0x424   :  { %v402_v47 = vpop.eup %401 }
 0x425   :  { %v263_v49 = vmul.f32 %v402_v47, %v255_v39 }
 0x427   :  { %v270_v51 = vmul.f32 %v357_v48, %v263_v49 }
 0x429   :  { %v277_v52 = vadd.f32 %v358_v50, %v270_v51 }
 0x42b   :  { %v278_v54 = vmax.f32 %v277_v52, 0.0 }
 0x42d   :  { %v286_v55 = vmul.f32 %v359_v53, %v278_v54 }
 0x42f   :  { %v287_v56 = vsel %vm249_vm3, %v286_v55, 0.0 }
 0x430   :  { %288 = vadd.xlane.f32.xlu0 %v287_v56 }
 0x4bd   :  { %v289_v57 = vpop.xlane.xlu0 %288 }
 0x4be   :  { %290 = vxpose.xlu0.b32.start.end [1/1] (short) (narrow) %v289_v57, 8 }
 0x4e7   :  { %398 = vset.pattern.permute.xlu0 %v430_v43 }
 0x53e   :  { %v306_v63 = vpop.trf.xlu0 }
 0x53f   :  { %v332_v0 = vadd.f32 %v331_v62, %v306_v63 }
 0x541   :  { %334 = vst.msk [vmem:[#allocation3] sm:$0x1] %vm333_vm4, %v332_v0 }
 0x542   :  { %414 = shalt.err (!%p411_p4)
}
 0x543   :  { %s415_s10 = scalar_lea.hbm %s569_s11, 16 }
 0x544   :  { %p416_p5 = scmp.ne.s32.totalorder %s569_s11, %s415_s10  ;;  %p419_p6 = scmp.lt.u32.totalorder %s415_s10, %s569_s11 }
 0x546   :  { %p421_p7 = pnand %p419_p6, %p416_p5 }
 0x548   :  { %424 = shalt.err (!%p421_p7)
}
 0x549   :  { %344 = dma.vmem_to_hbm [thread:$0]  %s342_s8, 16, %s569_s11, [#allocation4]  }
 0x54a   :  { %425 = dma.done.wait [#allocation4], 16  }
 0x54b   :  { %426 = vsyncadd [#allocation4], 4294967280 }
 0x54c   :  { %348 = vsyncpa [#allocation4], 1 }

</bundles_post_ra>
